<compile_context>
chip_gen: v6e
topology: v6e:2x2x1
jax: 0.10.0
libtpu: 0.0.40
codegen_flags: <defaults>
</compile_context>

<pallas_src>
import jax
import jax.numpy as jnp
from jax.experimental import pallas as pl
from jax.experimental.pallas import tpu as pltpu

LANE = 128


def _round_up(x, m):
    return (x + m - 1) // m * m


def _pad_channels(a, cp):
    c = a.shape[-1]
    if c == cp:
        return a
    return jnp.pad(a, [(0, 0)] * (a.ndim - 1) + [(0, cp - c)])


_VMEM_LIMIT_CACHE = None


def _vmem_limit_bytes():
    """Scoped VMEM limit: generous, but safe on v7x's 64 MiB physical VMEM."""
    global _VMEM_LIMIT_CACHE
    if _VMEM_LIMIT_CACHE is None:
        cap = 64 * 1024 * 1024
        try:
            cap = int(pltpu.get_tpu_info().vmem_capacity_bytes)
        except Exception:
            pass
        _VMEM_LIMIT_CACHE = max(32 * 1024 * 1024,
                                min(cap * 3 // 4, 96 * 1024 * 1024))
    return _VMEM_LIMIT_CACHE


def _tile_budget_bytes():
    # Combined per-step working-set budget; ~24 MiB also leaves headroom on v7x.
    return min(24 * 1024 * 1024, _vmem_limit_bytes() // 2)


def _pick_rows(h, per_row_bytes, *, need_even=False):
    """Largest divisor of h (even if required) whose working set fits budget."""
    cap = max(1, _tile_budget_bytes() // max(per_row_bytes, 1))
    best = None
    for t in range(1, h + 1):
        if h % t:
            continue
        if need_even and t % 2:
            continue
        if t <= cap:
            best = t
    if best is None and not need_even:
        best = 1
    return best


def _pick_tk(cin):
    if cin <= 512:
        return cin
    for tk in (512, 256, 128):
        if cin % tk == 0:
            return tk
    return cin


def _mm_hw(x3, w2):
    """(R, W, K) x (K, C) -> (R, W, C) f32 on the MXU.

    Uses an explicit 2-D matmul (sublane=M, lane=C) when the (R, W) collapse is
    a free relabel (W % 8 == 0); otherwise falls back to the 3-D einsum form.
    """
    r, w, k = x3.shape
    if w % 8 == 0:
        y = jnp.dot(x3.reshape(r * w, k), w2, preferred_element_type=jnp.float32)
        return y.reshape(r, w, w2.shape[1])
    return jnp.einsum("rwk,kc->rwc", x3, w2, preferred_element_type=jnp.float32)


# ----------------------------------------------------------------------------
# Kernel 1: lateral 1x1 conv  (optionally fused with top-down upsample + add)
# ----------------------------------------------------------------------------

def _lateral_kernel(x_ref, w_ref, b_ref, o_ref, acc_ref):
    # x: (1, th, W, tk) bf16   w: (tk, C) bf16   b: (1, C) f32
    # o: (1, th, W, C) bf16    acc: (th, W, C) f32 (VMEM)
    k = pl.program_id(2)

    @pl.when(k == 0)
    def _():
        acc_ref[...] = jnp.zeros_like(acc_ref)

    acc_ref[...] += _mm_hw(x_ref[0], w_ref[...])

    @pl.when(k == pl.num_programs(2) - 1)
    def _():
        o_ref[0] = (acc_ref[...] + b_ref[0][None, None, :]).astype(o_ref.dtype)


def _lateral_topdown_kernel(x_ref, w_ref, b_ref, top_ref, o_ref, acc_ref):
    # Epilogue fuses: o = conv1x1(x) + bias + nearest_upsample_2x(top),
    # so the top-down merge never round-trips through HBM on its own.
    k = pl.program_id(2)

    @pl.when(k == 0)
    def _():
        acc_ref[...] = jnp.zeros_like(acc_ref)

    acc_ref[...] += _mm_hw(x_ref[0], w_ref[...])

    @pl.when(k == pl.num_programs(2) - 1)
    def _():
        th2, w2, c = top_ref.shape[1], top_ref.shape[2], top_ref.shape[3]
        top = top_ref[0].astype(jnp.float32)                      # (th2, w2, C)
        # row duplication: outer axis, cheap tile duplication
        up = jnp.broadcast_to(top[:, None, :, :], (th2, 2, w2, c))
        up = up.reshape(2 * th2, w2, c)
        # TODO(synk): the column duplication below interleaves along the
        # sublane axis; an XLU roll-based construction would co-issue better.
        up = jnp.broadcast_to(up[:, :, None, :], (2 * th2, w2, 2, c))
        up = up.reshape(2 * th2, 2 * w2, c)
        o_ref[0] = (acc_ref[...] + b_ref[0][None, None, :] + up).astype(o_ref.dtype)


def _nearest_up2(t):
    n, h, w, c = t.shape
    t = jnp.broadcast_to(t[:, :, None, :, None, :], (n, h, 2, w, 2, c))
    return t.reshape(n, 2 * h, 2 * w, c)


def lateral_conv(x, w, b, top=None):
    """1x1 conv (+ optional fused '+ nearest_2x_upsample(top)') in NHWC.

    x:   (N, H, W, Cin_p) bf16, Cin_p % 128 == 0
    w:   (Cin_p, C_p) bf16      b: (1, C_p) f32
    top: (N, H//2, W//2, C_p) bf16 or None
    returns (N, H, W, C_p) bf16
    """
    N, H, W, Cin = x.shape
    C = w.shape[1]
    tk = _pick_tk(Cin)
    fused = top is not None
    if fused and (2 * top.shape[1] != H or 2 * top.shape[2] != W):
        raise ValueError("top-down merge requires an exact 2x spatial ratio")

    # rough per-strip-row working set: x blocks (2 bufs) + out blocks + f32 acc
    per_row = W * (4 * tk + 12 * C)
    th = _pick_rows(H, per_row, need_even=fused)
    if fused and th is None:
        # Fallback for shapes the fused epilogue does not cover:
        # unfused lateral + wrapper-side nearest-2x add.
        lat = lateral_conv(x, w, b)
        up = _nearest_up2(top.astype(jnp.float32))
        return (lat.astype(jnp.float32) + up).astype(jnp.bfloat16)

    grid = (H // th, N, Cin // tk)   # row strips first (v7x megacore), K last

    in_specs = [
        pl.BlockSpec((1, th, W, tk), lambda i, n, k: (n, i, 0, k)),
        pl.BlockSpec((tk, C), lambda i, n, k: (k, 0)),
        pl.BlockSpec((1, C), lambda i, n, k: (0, 0)),
    ]
    kernel = _lateral_kernel
    args = (x, w, b)
    if fused:
        in_specs.append(
            pl.BlockSpec((1, th // 2, W // 2, C), lambda i, n, k: (n, i, 0, 0)))
        kernel = _lateral_topdown_kernel
        args = (x, w, b, top)

    return pl.pallas_call(
        kernel,
        grid=grid,
        in_specs=in_specs,
        out_specs=pl.BlockSpec((1, th, W, C), lambda i, n, k: (n, i, 0, 0)),
        out_shape=jax.ShapeDtypeStruct((N, H, W, C), jnp.bfloat16),
        scratch_shapes=[pltpu.VMEM((th, W, C), jnp.float32)],
        compiler_params=pltpu.CompilerParams(
            dimension_semantics=("parallel", "parallel", "arbitrary"),
            vmem_limit_bytes=_vmem_limit_bytes()),
    )(*args)


# ----------------------------------------------------------------------------
# Kernel 2: 3x3 stride-1 pad-1 conv, row-strip tiled, im2col-lite (K = 3C)
# ----------------------------------------------------------------------------

def _conv3x3_kernel(x_ref, ht_ref, hb_ref, w3_ref, b_ref, o_ref, xpad_ref):
    # x:  (1, th, W, C) bf16       main strip rows (auto-pipelined)
    # ht/hb: (1, 1, W, C) bf16     halo rows (zero at image boundary)
    # w3: (3, 3C, C) bf16          b: (1, C) f32
    # o:  (1, th, W, C) bf16       xpad: VMEM (th+2, W+2, C) bf16 scratch
    th, W, C = x_ref.shape[1], x_ref.shape[2], x_ref.shape[3]
    dt = x_ref.dtype

    # Assemble the halo'd, column-padded strip in VMEM with plain slice stores.
    xpad_ref[:, 0:1, :] = jnp.zeros((th + 2, 1, C), dt)
    xpad_ref[:, W + 1:W + 2, :] = jnp.zeros((th + 2, 1, C), dt)
    xpad_ref[0:1, 1:W + 1, :] = ht_ref[0]
    xpad_ref[1:th + 1, 1:W + 1, :] = x_ref[0]
    xpad_ref[th + 1:th + 2, 1:W + 1, :] = hb_ref[0]

    # Three column-shifted views, built ONCE (not per tap), stacked along the
    # lane axis -> one (th+2, W, 3C) im2col-lite operand.
    # TODO(synk): the two off-grid column loads could become pltpu.roll+mask
    # on the XLU to overlap with the MXU.
    x_l = xpad_ref[:, 0:W, :]
    x_c = xpad_ref[:, 1:W + 1, :]
    x_r = xpad_ref[:, 2:W + 2, :]
    xcat = jnp.concatenate([x_l, x_c, x_r], axis=-1)              # (th+2, W, 3C)

    # Three K=3C matmuls (one per dy), summed as values and stored once
    # (no per-tap f32 accumulator RMW); bias folded into the single store.
    acc = _mm_hw(xcat[0:th], w3_ref[0])
    acc = acc + _mm_hw(xcat[1:th + 1], w3_ref[1])
    acc = acc + _mm_hw(xcat[2:th + 2], w3_ref[2])
    o_ref[0] = (acc + b_ref[0][None, None, :]).astype(o_ref.dtype)


def _make_halos(x, th):
    """Per-strip 1-row halos (zero rows at the image boundary)."""
    N, H, W, C = x.shape
    S = H // th
    zrow = jnp.zeros((N, 1, W, C), x.dtype)
    if S == 1:
        return zrow, zrow
    top = jnp.concatenate([zrow, x[:, th - 1::th, :, :][:, :S - 1]], axis=1)
    bot = jnp.concatenate([x[:, th::th, :, :][:, :S - 1], zrow], axis=1)
    return top, bot


def conv3x3(x, w3, b):
    """3x3 / stride 1 / pad 1 conv in NHWC, bf16 output.

    x: (N, H, W, C) bf16   w3: (3, 3C, C) bf16 (dx stacked along Cin)
    b: (1, C) f32          returns (N, H, W, C) bf16
    """
    N, H, W, C = x.shape
    per_row = 36 * W * C            # strip + xpad + xcat + f32 temps + io bufs
    th = _pick_rows(H, per_row)
    S = H // th
    halo_top, halo_bot = _make_halos(x, th)

    # TODO(synk): single-buffer the constant w3/b blocks (pl.Buffered(1)) to
    # reclaim a little VMEM on v7x.
    return pl.pallas_call(
        _conv3x3_kernel,
        grid=(S, N),
        in_specs=[
            pl.BlockSpec((1, th, W, C), lambda i, n: (n, i, 0, 0)),
            pl.BlockSpec((1, 1, W, C), lambda i, n: (n, i, 0, 0)),
            pl.BlockSpec((1, 1, W, C), lambda i, n: (n, i, 0, 0)),
            pl.BlockSpec((3, 3 * C, C), lambda i, n: (0, 0, 0)),
            pl.BlockSpec((1, C), lambda i, n: (0, 0)),
        ],
        out_specs=pl.BlockSpec((1, th, W, C), lambda i, n: (n, i, 0, 0)),
        out_shape=jax.ShapeDtypeStruct((N, H, W, C), jnp.bfloat16),
        scratch_shapes=[pltpu.VMEM((th + 2, W + 2, C), jnp.bfloat16)],
        compiler_params=pltpu.CompilerParams(
            dimension_semantics=("parallel", "parallel"),
            vmem_limit_bytes=_vmem_limit_bytes()),
    )(x, halo_top, halo_bot, w3, b)


# ----------------------------------------------------------------------------
# Parameters
# ----------------------------------------------------------------------------

def _kaiming_uniform(key, shape, fan_in, a=1.0):
    # matches nn.init.kaiming_uniform_(w, a=1): bound = sqrt(6 / ((1+a^2)*fan_in))
    bound = (6.0 / ((1.0 + a * a) * fan_in)) ** 0.5
    return jax.random.uniform(key, shape, minval=-bound, maxval=bound,
                              dtype=jnp.float32)


def init_fpn_params(key, in_channels_list, out_channels):
    """Logical (unpadded, f32) parameters in IO / HWIO layout."""
    inner_ws, inner_bs, layer_ws, layer_bs = [], [], [], []
    for cin in in_channels_list:
        key, k1, k2 = jax.random.split(key, 3)
        inner_ws.append(_kaiming_uniform(k1, (cin, out_channels), fan_in=cin))
        inner_bs.append(jnp.zeros((out_channels,), jnp.float32))
        layer_ws.append(_kaiming_uniform(
            k2, (3, 3, out_channels, out_channels), fan_in=out_channels * 9))
        layer_bs.append(jnp.zeros((out_channels,), jnp.float32))
    return inner_ws, inner_bs, layer_ws, layer_bs


def prepare_fpn_params(params):
    """Pad channel dims to multiples of 128 (lane-dense), cast weights to bf16,
    and reshape the 3x3 weights to the im2col-lite (3, 3C, C) layout."""
    inner_ws, inner_bs, layer_ws, layer_bs = params
    cp = _round_up(layer_ws[0].shape[-1], LANE)
    k_iw, k_ib, k_lw, k_lb = [], [], [], []
    for w, b in zip(inner_ws, inner_bs):
        cin_p = _round_up(w.shape[0], LANE)
        wp = jnp.zeros((cin_p, cp), jnp.float32)
        wp = wp.at[: w.shape[0], : w.shape[1]].set(w)
        k_iw.append(wp.astype(jnp.bfloat16))
        k_ib.append(_pad_channels(b, cp).reshape(1, cp))
    for w, b in zip(layer_ws, layer_bs):
        wp = jnp.zeros((3, 3, cp, cp), jnp.float32)
        wp = wp.at[:, :, : w.shape[2], : w.shape[3]].set(w)
        k_lw.append(wp.reshape(3, 3 * cp, cp).astype(jnp.bfloat16))
        k_lb.append(_pad_channels(b, cp).reshape(1, cp))
    return k_iw, k_ib, k_lw, k_lb


# ----------------------------------------------------------------------------
# FPN forward
# ----------------------------------------------------------------------------

def fpn_forward_nhwc(xs_nhwc, kparams, out_channels):
    inner_ws, inner_bs, layer_ws, layer_bs = kparams
    xs = [_pad_channels(x.astype(jnp.bfloat16), inner_ws[i].shape[0])
          for i, x in enumerate(xs_nhwc)]

    last_inner = lateral_conv(xs[-1], inner_ws[-1], inner_bs[-1])
    results = [conv3x3(last_inner, layer_ws[-1], layer_bs[-1])]
    for i in range(len(xs) - 2, -1, -1):
        # fused: 1x1 lateral conv + bias + nearest-2x upsample of previous map
        last_inner = lateral_conv(xs[i], inner_ws[i], inner_bs[i],
                                  top=last_inner)
        results.insert(0, conv3x3(last_inner, layer_ws[i], layer_bs[i]))

    # top_blocks == LastLevelMaxPool: max_pool2d(k=1, s=2) == stride-2
    # subsample of the smallest map (pure data movement).
    # TODO(synk): fuse this subsample into the last conv3x3 epilogue.
    results.append(results[-1][:, ::2, ::2, :])
    return [r[..., :out_channels] for r in results]


def fpn_forward(xs_nchw, kparams, out_channels):
    """NCHW interface (PyTorch parity); kernels run NHWC internally."""
    # TODO(synk): in an end-to-end NHWC pipeline these boundary transposes
    # disappear entirely.
    xs = [jnp.transpose(x, (0, 2, 3, 1)) for x in xs_nchw]
    outs = fpn_forward_nhwc(xs, kparams, out_channels)
    return tuple(jnp.transpose(r, (0, 3, 1, 2)) for r in outs)


# ----------------------------------------------------------------------------
# Pure-JAX reference (mirrors the bf16 cast points of the kernel path)
# ----------------------------------------------------------------------------

def _ref_fpn(xs_nchw, params):
    inner_ws, inner_bs, layer_ws, layer_bs = params
    xs = [jnp.transpose(x, (0, 2, 3, 1)).astype(jnp.bfloat16) for x in xs_nchw]

    def c1(x, w, b):
        return jnp.einsum("nhwi,io->nhwo", x, w.astype(jnp.bfloat16),
                          preferred_element_type=jnp.float32) + b

    def c3(x, w, b):
        wb = w.astype(jnp.bfloat16)
        xp = jnp.pad(x, ((0, 0), (1, 1), (1, 1), (0, 0)))
        H, W = x.shape[1], x.shape[2]
        out = None
        for dy in range(3):
            for dx in range(3):
                t = jnp.einsum("nhwi,io->nhwo",
                               xp[:, dy:dy + H, dx:dx + W, :], wb[dy, dx],
                               preferred_element_type=jnp.float32)
                out = t if out is None else out + t
        return (out + b).astype(jnp.bfloat16)

    def up2(t):
        t = t.astype(jnp.float32)
        n, h, w, c = t.shape
        t = jnp.broadcast_to(t[:, :, None, :, None, :], (n, h, 2, w, 2, c))
        return t.reshape(n, 2 * h, 2 * w, c)

    last_inner = c1(xs[-1], inner_ws[-1], inner_bs[-1]).astype(jnp.bfloat16)
    results = [c3(last_inner, layer_ws[-1], layer_bs[-1])]
    for i in range(len(xs) - 2, -1, -1):
        li = c1(xs[i], inner_ws[i], inner_bs[i]) + up2(last_inner)
        last_inner = li.astype(jnp.bfloat16)
        results.insert(0, c3(last_inner, layer_ws[i], layer_bs[i]))
    results.append(results[-1][:, ::2, ::2, :])
    return tuple(jnp.transpose(r, (0, 3, 1, 2)) for r in results)


# ----------------------------------------------------------------------------
# Main
# ----------------------------------------------------------------------------

if __name__ == "__main__":
    key = jax.random.PRNGKey(0)

    batch = 2
    in_channels_list = [32, 64, 128]         # increasing depth (C3, C4, C5 style)
    out_channels = 64
    spatials = [32, 16, 8]                   # each level halves the resolution

    key, pkey = jax.random.split(key)
    params = init_fpn_params(pkey, in_channels_list, out_channels)
    kparams = prepare_fpn_params(params)

    xs = []
    for cin, s in zip(in_channels_list, spatials):
        key, k = jax.random.split(key)
        xs.append(jax.random.normal(k, (batch, cin, s, s), dtype=jnp.float32))

    outs = jax.block_until_ready(fpn_forward(xs, kparams, out_channels))
    refs = jax.block_until_ready(_ref_fpn(xs, params))

    assert len(outs) == len(in_channels_list) + 1
    for o, r in zip(outs, refs):
        assert o.shape == r.shape and o.dtype == r.dtype
        assert jnp.allclose(o.astype(jnp.float32), r.astype(jnp.float32),
                            atol=3e-2, rtol=3e-2), "mismatch vs reference"

    print("KERNEL_OK")
</pallas_src>

<mosaic_0001>
module attributes {stable_mosaic.version = 11 : i64} {
  func.func @_lateral_kernel(%arg0: i32, %arg1: i32, %arg2: i32, %arg3: memref<1x8x8x128xbf16, #tpu.memory_space<vmem>>, %arg4: memref<128x128xbf16, #tpu.memory_space<vmem>>, %arg5: memref<1x128xf32, #tpu.memory_space<vmem>>, %arg6: memref<1x8x8x128xbf16, #tpu.memory_space<vmem>>, %arg7: memref<8x8x128xf32, #tpu.memory_space<vmem>>) attributes {dimension_semantics = [#tpu.dimension_semantics<parallel>, #tpu.dimension_semantics<parallel>, #tpu.dimension_semantics<arbitrary>], iteration_bounds = array<i64: 1, 2, 1>, scalar_prefetch = 0 : i64, scratch_operands = 1 : i64, tpu.core_type = #tpu.core_type<tc>, window_params = [{transform_indices = @transform_0, window_bounds = array<i64: 1, 8, 8, 128>}, {transform_indices = @transform_1, window_bounds = array<i64: 128, 128>}, {pipeline_mode = #tpu.pipeline_mode<synchronous>, transform_indices = @transform_2, window_bounds = array<i64: 1, 128>}, {transform_indices = @transform_3, window_bounds = array<i64: 1, 8, 8, 128>}]} {
    %c0_i32 = arith.constant 0 : i32
    %0 = arith.cmpi eq, %arg2, %c0_i32 : i32
    %1 = arith.extui %0 : i1 to i32
    %c0_i32_0 = arith.constant 0 : i32
    %2 = arith.cmpi ne, %1, %c0_i32_0 : i32
    scf.if %2 {
      %cst_14 = arith.constant 0.000000e+00 : f32
      %15 = vector.broadcast %cst_14 : f32 to vector<8x8x128xf32>
      %c0_15 = arith.constant 0 : index
      %c0_16 = arith.constant 0 : index
      %c0_17 = arith.constant 0 : index
      %16 = vector.load %arg7[%c0_15, %c0_16, %c0_17] : memref<8x8x128xf32, #tpu.memory_space<vmem>>, vector<8x8x128xf32>
      tpu.vector_store %arg7[%c0_15, %c0_16, %c0_17], %15 {strides = array<i32>} : memref<8x8x128xf32, #tpu.memory_space<vmem>>, vector<8x8x128xf32>,
    } else {
    }
    %c0 = arith.constant 0 : index
    %c0_1 = arith.constant 0 : index
    %c0_2 = arith.constant 0 : index
    %3 = vector.load %arg7[%c0, %c0_1, %c0_2] : memref<8x8x128xf32, #tpu.memory_space<vmem>>, vector<8x8x128xf32>
    %c0_3 = arith.constant 0 : index
    %c0_4 = arith.constant 0 : index
    %c0_5 = arith.constant 0 : index
    %c0_6 = arith.constant 0 : index
    %4 = vector.load %arg3[%c0_3, %c0_4, %c0_5, %c0_6] : memref<1x8x8x128xbf16, #tpu.memory_space<vmem>>, vector<1x8x8x128xbf16>
    %5 = vector.shape_cast %4 : vector<1x8x8x128xbf16> to vector<8x8x128xbf16>
    %c0_7 = arith.constant 0 : index
    %c0_8 = arith.constant 0 : index
    %6 = vector.load %arg4[%c0_7, %c0_8] : memref<128x128xbf16, #tpu.memory_space<vmem>>, vector<128x128xbf16>
    %7 = vector.shape_cast %5 : vector<8x8x128xbf16> to vector<64x128xbf16>
    %cst = arith.constant dense<0.000000e+00> : vector<64x128xf32>
    %8 = tpu.matmul %7, %6, %cst {dimension_numbers = #tpu.dot_dimension_numbers<[1], [0], [0], [1], [0, 0, 1, 1], [], []>} : vector<64x128xbf16>, vector<128x128xbf16>, vector<64x128xf32> -> vector<64x128xf32>
    %9 = vector.shape_cast %8 : vector<64x128xf32> to vector<8x8x128xf32>
    %10 = arith.addf %3, %9 : vector<8x8x128xf32>
    %c0_9 = arith.constant 0 : index
    %c0_10 = arith.constant 0 : index
    %c0_11 = arith.constant 0 : index
    %11 = vector.load %arg7[%c0_9, %c0_10, %c0_11] : memref<8x8x128xf32, #tpu.memory_space<vmem>>, vector<8x8x128xf32>
    tpu.vector_store %arg7[%c0_9, %c0_10, %c0_11], %10 {strides = array<i32>} : memref<8x8x128xf32, #tpu.memory_space<vmem>>, vector<8x8x128xf32>,
    %c0_i32_12 = arith.constant 0 : i32
    %12 = arith.cmpi eq, %arg2, %c0_i32_12 : i32
    %13 = arith.extui %12 : i1 to i32
    %c0_i32_13 = arith.constant 0 : i32
    %14 = arith.cmpi ne, %13, %c0_i32_13 : i32
    scf.if %14 {
      %c0_14 = arith.constant 0 : index
      %c0_15 = arith.constant 0 : index
      %c0_16 = arith.constant 0 : index
      %15 = vector.load %arg7[%c0_14, %c0_15, %c0_16] : memref<8x8x128xf32, #tpu.memory_space<vmem>>, vector<8x8x128xf32>
      %c0_17 = arith.constant 0 : index
      %c0_18 = arith.constant 0 : index
      %16 = vector.load %arg5[%c0_17, %c0_18] : memref<1x128xf32, #tpu.memory_space<vmem>>, vector<1x128xf32>
      %17 = vector.shape_cast %16 : vector<1x128xf32> to vector<128xf32>
      %18 = vector.shape_cast %17 : vector<128xf32> to vector<1x1x128xf32>
      %19 = vector.broadcast %18 : vector<1x1x128xf32> to vector<8x8x128xf32>
      %20 = arith.addf %15, %19 : vector<8x8x128xf32>
      %21 = arith.truncf %20 : vector<8x8x128xf32> to vector<8x8x128xbf16>
      %c0_19 = arith.constant 0 : index
      %c0_20 = arith.constant 0 : index
      %c0_21 = arith.constant 0 : index
      %c0_22 = arith.constant 0 : index
      %22 = vector.load %arg6[%c0_19, %c0_20, %c0_21, %c0_22] : memref<1x8x8x128xbf16, #tpu.memory_space<vmem>>, vector<1x8x8x128xbf16>
      %23 = vector.shape_cast %22 : vector<1x8x8x128xbf16> to vector<8x8x128xbf16>
      %24 = vector.shape_cast %21 : vector<8x8x128xbf16> to vector<1x8x8x128xbf16>
      tpu.vector_store %arg6[%c0_19, %c0_20, %c0_21, %c0_22], %24 {strides = array<i32>} : memref<1x8x8x128xbf16, #tpu.memory_space<vmem>>, vector<1x8x8x128xbf16>,
    } else {
    }
    return
  }
  func.func @transform_0(%arg0: i32, %arg1: i32, %arg2: i32) -> (i32, i32, i32, i32) {
    %c0_i32 = arith.constant 0 : i32
    %c0_i32_0 = arith.constant 0 : i32
    return %arg1, %arg0, %c0_i32, %arg2 : i32, i32, i32, i32
  }
  func.func @transform_1(%arg0: i32, %arg1: i32, %arg2: i32) -> (i32, i32) {
    %c0_i32 = arith.constant 0 : i32
    %c0_i32_0 = arith.constant 0 : i32
    return %arg2, %c0_i32 : i32, i32
  }
  func.func @transform_2(%arg0: i32, %arg1: i32, %arg2: i32) -> (i32, i32) {
    %c0_i32 = arith.constant 0 : i32
    %c0_i32_0 = arith.constant 0 : i32
    %c0_i32_1 = arith.constant 0 : i32
    return %c0_i32, %c0_i32_0 : i32, i32
  }
  func.func @transform_3(%arg0: i32, %arg1: i32, %arg2: i32) -> (i32, i32, i32, i32) {
    %c0_i32 = arith.constant 0 : i32
    %c0_i32_0 = arith.constant 0 : i32
    %c0_i32_1 = arith.constant 0 : i32
    return %arg1, %arg0, %c0_i32, %c0_i32_0 : i32, i32, i32, i32
  }
}

</mosaic_0001>

<bundles_post_ra>
// kernel: tpu_custom_call.1
= control target key start
LH: loop header
LB: loop body
LE: loop exit
PB: predicated region body
PF: predicated region fallthrough
CT: control target
= control target key end

     0   :  { %8 = vsyncpa [#allocation4], 0  ;;  %s1165_s0 = inlined_call_operand.hbm [shape: bf16[2,8,8,128], index: 0, kind: input, shape index: {}]   ;;  %s1166_s1 = inlined_call_operand.hbm [shape: bf16[128,128], index: 1, kind: input, shape index: {}]   ;;  %s1167_s2 = inlined_call_operand.vmem [shape: f32[1,128], index: 2, kind: input, shape index: {}]   ;;  %s1168_s3 = inlined_call_operand.hbm [shape: bf16[2,8,8,128], index: 3, kind: output, shape index: {}]  }
   0x1   :  { %10 = vsyncpa [#allocation4 + $0x1], 0 }
   0x2   :  { %11 = vsyncpa [#allocation7], 0 }
   0x3   :  { %12 = vsyncpa [#allocation5], 0 }
   0x4   :  { %14 = vsyncpa [#allocation5 + $0x1], 0  ;;  %s965_s12 = smov 0   ;;  %s967_s13 = smov 0  }
   0x5   :  { %s969_s14 = smov 0   ;;  %s971_s15 = smov 0  }
   0x6   :  { %s973_s16 = smov 0   ;;  %s975_s17 = smov 0  }
   0x7 LB: > { %s602_s18 = sadd.s32 4294967295, %s936_s17   ;;  %s603_s19 = sadd.s32 4294967294, %s936_s17   ;;  %s936_s17 = sphi %s975_s17, %s20_s17   ;;  %s932_s16 = sphi %s973_s16, %s1190_s16   ;;  %s928_s15 = sphi %s971_s15, %s1189_s15   ;;  %s924_s14 = sphi %s969_s14, %s1188_s14   ;;  %s920_s13 = sphi %s967_s13, %s1187_s13   ;;  %s916_s12 = sphi %s965_s12, %s1186_s12  }
   0x8   : > { %p63_p0 = scmp.ne.s32.totalorder %s920_s13, %s916_s12  ;;  %p999_p1 = scmp.eq.s32.totalorder %s602_s18, 0 }
   0x9   : > { %p1003_p2 = scmp.eq.s32.totalorder %s602_s18, 1  ;;  %p142_p3 = scmp.eq.s32.totalorder %s603_s19, 1 }
   0xa   : > { %p1009_p4 = por %p999_p1, %p63_p0  ;;  %p604_p5 = scmp.ge.s32.totalorder %s936_s17, 1 }
   0xb   : > { %p1014_p6 = por %p142_p3, %p63_p0  ;;  %p149_p7 = scmp.lt.s32.totalorder %s936_s17, 3 }
   0xc   : > { %s1174_s22 = scalar_select %p1009_p4, 1, 0 }
   0xd   : > { %s1175_s23 = scalar_select %p1014_p6, 1, 0 }
   0xe   : > { %p1019_p8 = pnand %p604_p5, %p149_p7  ;;  %s938_s25 = smov [#allocation6]  }
   0xf   : > { %s164_s26 = sshll.u32 %s938_s25, 4  ;;  %s35_s28 = sadd.s32 1, %s932_s16  ;;  %s165_s26 = int_to_ptr.vmem [resolvable:$true] %s164_s26 }
  0x10   : > { %p717_p9 = pneg %p1019_p8  ;;  %s809_s29 = scalar_lea.vmem %s165_s26, 1024 }
  0x11   : > { %p810_p13 = scmp.ne.s32.totalorder %s165_s26, %s809_s29  ;;  %p817_p5 = scmp.lt.s32.totalorder %s165_s26, %s165_s26 }
  0x12   : > { %p1028_p11 = pnand %p717_p9, %p999_p1  ;;  %p818_p7 = scmp.lt.s32.totalorder %s809_s29, %s809_s29 }
  0x14   : > { %p800_p12 = pneg %p1028_p11  ;;  %p819_p6 = por %p818_p7, %p817_p5 }
  0x16   : > { %p812_p0 = pnand %p810_p13, %p800_p12 }
  0x18   : > { %p813_p3 = pneg %p812_p0 }
  0x1a   : > { %p820_p4 = pnand %p819_p6, %p813_p3 }
  0x1c   : > { %823 = shalt.err (!%p820_p4)
}
  0x1d   : > { %s1170_s30 = smov 64   ;;  %s1171_s4 = smov 4  }
  0x1e   : > { %720 = dma.hbm_to_vmem [thread:$0]  (!%p1028_p11), %s1166_s1, 1024, %s165_s26, [#allocation7], %s1170_s30, %s1170_s30, %s1171_s4  }
  0x1f   : > { %p37_p4 = scmp.ge.s32.totalorder %s35_s28, 2  ;;  %s50_s7 = sadd.s32 1, %s924_s14 }
  0x20   : > { %p57_p6 = scmp.ne.s32.totalorder %s924_s14, %s920_s13  ;;  %p58_p9 = scmp.eq.s32.totalorder %s936_s17, 0 }
  0x21   : > { %s1192_s28 = smov (%p37_p4, %s35_s28), 0  ;;  %p730_p0 = scmp.lt.s32.totalorder %s936_s17, 2 }
  0x22   : > { %p1049_p12 = por %p58_p9, %p57_p6  ;;  %p1055_p13 = por %p1003_p2, %p57_p6 }
  0x23   : > { %s43_s10 = ssub.s32 %s932_s16, %s1192_s28  ;;  %s181_s11 = sand.u32 1, %s924_s14  }
  0x24   : > { %p48_p11 = scmp.eq.s32.totalorder %s43_s10, 0  ;;  %s607_s18 = sshll.u32 %s181_s11, 5 }
  0x25   : > { %s632_s25 = sshll.u32 %s932_s16, 9  ;;  %s185_s5 = scalar_lea.vmem [#allocation3], %s607_s18 }
  0x26   : > { %s1064_s19 = scalar_select %p48_p11, %s924_s14, %s50_s7  }
  0x27   : > { %s194_s29 = scalar_lea.hbm %s1165_s0, %s632_s25  ;;  %s195_s6 = sshll.u32 %s185_s5, 4  ;;  %s196_s6 = int_to_ptr.vmem [resolvable:$true] %s195_s6 }
  0x28   : > { %p1072_p2 = pnand %p730_p0, %p1049_p12  ;;  %s182_s30 = scalar_lea.sflag [#allocation4], %s181_s11 }
  0x29   : > { %s837_s10 = scalar_lea.vmem %s196_s6, 512  ;;  %s941_s7 = smov [#allocation3]  }
  0x2a   : > { %p826_p3 = pneg %p1072_p2  ;;  %p838_p5 = scmp.ne.s32.totalorder %s196_s6, %s837_s10 }
  0x2b   : > { %s842_s4 = sshll.u32 %s941_s7, 4  ;;  %s843_s4 = int_to_ptr.vmem [resolvable:$false] %s842_s4 }
  0x2c   : > { %p840_p7 = pnand %p838_p5, %p826_p3  ;;  %s844_s25 = scalar_lea.vmem %s843_s4, 1024 }
  0x2d   : > { %p845_p6 = scmp.lt.s32.totalorder %s196_s6, %s843_s4  ;;  %p846_p9 = scmp.lt.s32.totalorder %s844_s25, %s837_s10 }
  0x2e   : > { %p841_p4 = pneg %p840_p7 }
  0x2f   : > { %p847_p11 = por %p846_p9, %p845_p6 }
  0x31   : > { %p848_p10 = pnand %p847_p11, %p841_p4 }
  0x33   : > { %851 = shalt.err (!%p848_p10)
}
  0x34   : > { %s1181_s8 = smov 4   ;;  %s1182_s18 = smov 64  }
  0x35   : > { %724 = dma.hbm_to_vmem [thread:$0]  (!%p1072_p2), %s194_s29, 512, %s196_s6, %s182_s30, %s1182_s18, %s1182_s18, %s1181_s8  }
  0x36   : > { %207 = sbr.rel (%p1019_p8) target bundleno = 312 (0x138), region = 32  ;;  %s1086_s11 = sand.u32 (!%p1019_p8), 1, %s920_s13  }
  0x37   : > { %s611_s4 = sshll.u32 (!%p1019_p8), %s1086_s11, 5  ;;  %s210_s26 = scalar_lea.sflag (!%p1019_p8), [#allocation4], %s1086_s11 }
  0x38   : > { %s1092_s27 = scalar_lea.vmem (!%p1019_p8), [#allocation3], %s611_s4  ;;  %p1183_p10 = scmp.ne.s32.totalorder (!%p1019_p8), %s1174_s22, 0 }
  0x3b   : > { %903 = dma.done.wait (%p1183_p10), %s210_s26, 512  }
  0x3c   : > { %905 = vsyncadd (%p1183_p10), %s210_s26, 4294966784 }
  0x3d   : > { %907 = dma.done.wait (%p999_p1), [#allocation7], 1024  }
  0x3e   : > { %909 = vsyncadd (%p999_p1), [#allocation7], 4294966272  ;;  %v786_v0 = vld [vmem:[#allocation6 + $0x38] sm:$0xff]   ;;  %v787_v1 = vld [vmem:[#allocation6 + $0x30] sm:$0xff]   ;;  %s239_s24 = scalar_lea.vmem [#allocation8], %s611_s4  ;;  %s633_s29 = sshll.u32 %s928_s15, 9 }
  0x3f   : > { %669 = vmatprep.subr.bf16.mxu0 %v786_v0  ;;  %693 = vmatprep.subr.bf16.mxu1 %v786_v0  ;;  %v788_v2 = vld [vmem:[#allocation6 + $0x28] sm:$0xff]   ;;  %v789_v3 = vld [vmem:[#allocation6 + $0x20] sm:$0xff]   ;;  %v795_v5 = vld [vmem:[%s1092_s27 + $0x10] sm:$0xff]   ;;  %s499_s30 = sshll.u32 %s239_s24, 4  ;;  %s1117_s21 = scalar_lea.hbm %s1168_s3, %s633_s29  ;;  %s1112_s30 = int_to_ptr.vmem [resolvable:$true] %s499_s30 }
  0x40   : > { %670 = vmatpush3.bf16.msra.mxu0 %v786_v0  ;;  %701 = vmatpush3.bf16.msra.mxu1 %v786_v0  ;;  %v794_v4 = vld [vmem:[%s1092_s27] sm:$0xff]   ;;  %v790_v6 = vld [vmem:[#allocation6 + $0x18] sm:$0xff]   ;;  %v791_v7 = vld [vmem:[#allocation6 + $0x10] sm:$0xff]   ;;  %s484_s15 = scalar_lea.sflag [#allocation5], %s1086_s11  ;;  %s852_s10 = scalar_lea.vmem %s1112_s30, 512 }
  0x41   : > { %671 = vmatprep.subr.bf16.mxu0 %v787_v1  ;;  %694 = vmatprep.subr.bf16.mxu1 %v787_v1  ;;  %v792_v8 = vld [vmem:[#allocation6 + $0x8] sm:$0xff]   ;;  %v793_v9 = vld [vmem:[#allocation6] sm:$0xff]   ;;  %v797_v11 = vld [vmem:[%s1092_s27 + $0x18] sm:$0xff]   ;;  %p853_p1 = scmp.ne.s32.totalorder %s1112_s30, %s852_s10  ;;  %s942_s7 = smov [#allocation8]  }
  0x42   : > { %685 = vmatprep.mubr.bf16.mxu0 %v794_v4  ;;  %689 = vmatprep.mubr.bf16.mxu1 %v795_v5  ;;  %v796_v10 = vld [vmem:[%s1092_s27 + $0x8] sm:$0xff]   ;;  %v626_v14 = vld [vmem:[%s1167_s2] ss:$0 sm:$0xff]  ;;  %s856_s25 = sshll.u32 %s942_s7, 4  ;;  %s857_s25 = int_to_ptr.vmem [resolvable:$false] %s856_s25 }
  0x43   : > { %p854_p8 = pnand %p853_p1, %p1055_p13  ;;  %s858_s8 = scalar_lea.vmem %s857_s25, 1024 }
  0x44   : > { %672 = vmatpush3.bf16.msra.mxu0 %v787_v1  ;;  %702 = vmatpush3.bf16.msra.mxu1 %v787_v1  ;;  %p859_p0 = scmp.lt.s32.totalorder %s1112_s30, %s857_s25  ;;  %p860_p2 = scmp.lt.s32.totalorder %s858_s8, %s852_s10 }
  0x45   : > { %673 = vmatprep.subr.bf16.mxu0 %v788_v2  ;;  %695 = vmatprep.subr.bf16.mxu1 %v788_v2  ;;  %p855_p12 = pneg %p854_p8 }
  0x46   : > { %p861_p3 = por %p860_p2, %p859_p0 }
  0x48   : > { %674 = vmatpush3.bf16.msra.mxu0 %v788_v2  ;;  %703 = vmatpush3.bf16.msra.mxu1 %v788_v2  ;;  %p862_p5 = pnand %p861_p3, %p855_p12 }
  0x49   : > { %675 = vmatprep.subr.bf16.mxu0 %v789_v3  ;;  %696 = vmatprep.subr.bf16.mxu1 %v789_v3 }
  0x4c   : > { %676 = vmatpush3.bf16.msra.mxu0 %v789_v3  ;;  %704 = vmatpush3.bf16.msra.mxu1 %v789_v3 }
  0x4d   : > { %677 = vmatprep.subr.bf16.mxu0 %v790_v6  ;;  %697 = vmatprep.subr.bf16.mxu1 %v790_v6 }
  0x50   : > { %678 = vmatpush3.bf16.msra.mxu0 %v790_v6  ;;  %705 = vmatpush3.bf16.msra.mxu1 %v790_v6 }
  0x51   : > { %679 = vmatprep.subr.bf16.mxu0 %v791_v7  ;;  %698 = vmatprep.subr.bf16.mxu1 %v791_v7 }
  0x54   : > { %680 = vmatpush3.bf16.msra.mxu0 %v791_v7  ;;  %706 = vmatpush3.bf16.msra.mxu1 %v791_v7 }
  0x55   : > { %681 = vmatprep.subr.bf16.mxu0 %v792_v8  ;;  %699 = vmatprep.subr.bf16.mxu1 %v792_v8 }
  0x58   : > { %682 = vmatpush3.bf16.msra.mxu0 %v792_v8  ;;  %707 = vmatpush3.bf16.msra.mxu1 %v792_v8 }
  0x59   : > { %683 = vmatprep.subr.bf16.mxu0 %v793_v9  ;;  %700 = vmatprep.subr.bf16.mxu1 %v793_v9 }
  0x5c   : > { %684 = vmatpush3.bf16.msra.mxu0 %v793_v9  ;;  %708 = vmatpush3.bf16.msra.mxu1 %v793_v9 }
  0x5f   : > { %686 = vmatmul.mubr.bf16.vlgmr.msra.gmra.mxu0 %v796_v10  ;;  %690 = vmatmul.mubr.bf16.vlgmr.msra.gmra.mxu1 %v797_v11 }
 0x11f   : > { %v687_v12 = vpop.f32.mrf.mxu0  ;;  %v691_v13 = vpop.f32.mrf.mxu1 }
 0x120   : > { %v461_v19 = vadd.f32 %v687_v12, %v626_v14  ;;  %v465_v20 = vadd.f32 %v691_v13, %v626_v14 }
 0x121   : > { %v394_v15 = vpop.f32.mrf.mxu0  ;;  %v410_v16 = vpop.f32.mrf.mxu1 }
 0x122   : > { %v459_v23 = vadd.f32 %v626_v14, %v394_v15  ;;  %v463_v24 = vadd.f32 %v626_v14, %v410_v16 }
 0x123   : > { %v688_v17 = vpop.f32.mrf.mxu0  ;;  %v692_v18 = vpop.f32.mrf.mxu1 }
 0x124   : > { %v462_v21 = vadd.f32 %v688_v17, %v626_v14  ;;  %v466_v22 = vadd.f32 %v692_v18, %v626_v14 }
 0x125   : > { %v397_v25 = vpop.f32.mrf.mxu0  ;;  %v413_v26 = vpop.f32.mrf.mxu1 }
 0x126   : > { %v642_v27 = vpack.c.bf16 %v462_v21, %v461_v19  ;;  %v652_v28 = vpack.c.bf16 %v466_v22, %v465_v20  ;;  %v460_v29 = vadd.f32 %v626_v14, %v397_v25  ;;  %v464_v30 = vadd.f32 %v626_v14, %v413_v26 }
 0x128   : > { %654 = vst [vmem:[%s239_s24 + $0x8] sm:$0xff] %v642_v27   ;;  %656 = vst [vmem:[%s239_s24 + $0x18] sm:$0xff] %v652_v28   ;;  %v637_v31 = vpack.c.bf16 %v460_v29, %v459_v23  ;;  %v647_v32 = vpack.c.bf16 %v464_v30, %v463_v24 }
 0x12a   : > { %638 = vst [vmem:[%s239_s24] sm:$0xff] %v637_v31   ;;  %655 = vst [vmem:[%s239_s24 + $0x10] sm:$0xff] %v647_v32  }
 0x12b   : > { %865 = shalt.err (!%p862_p5)
}
 0x12c   : > { %s866_s18 = scalar_lea.hbm %s1117_s21, 512  ;;  %s870_s27 = scalar_lea.hbm %s1168_s3, 1024 }
 0x12d   : > { %p867_p7 = scmp.ne.s32.totalorder %s1117_s21, %s866_s18  ;;  %p871_p9 = scmp.lt.s32.totalorder %s1117_s21, %s1168_s3 }
 0x12e   : > { %p872_p11 = scmp.lt.s32.totalorder %s870_s27, %s866_s18 }
 0x12f   : > { %p868_p4 = pnand %p867_p7, %p1055_p13 }
 0x130   : > { %p873_p10 = por %p872_p11, %p871_p9 }
 0x131   : > { %p869_p6 = pneg %p868_p4 }
 0x133   : > { %p874_p1 = pnand %p873_p10, %p869_p6 }
 0x135   : > { %877 = shalt.err (!%p874_p1)
}
 0x136   : > { %s943_s24 = smov 64   ;;  %s944_s29 = smov 4  }
 0x137   : > { %715 = dma.vmem_to_hbm [thread:$0]  (%p1055_p13), %s1112_s30, 512, %s1117_s21, %s484_s15, %s943_s24, %s943_s24, %s944_s29  }
 0x138 PF: > { %s514_s5 = sand.u32 1, %s916_s12   ;;  %p1184_p8 = scmp.ne.s32.totalorder %s1175_s23, 0 }
 0x139   : > { %p1185_p12 = scmp.ge.s32.totalorder %s936_s17, 2  ;;  %s515_s6 = scalar_lea.sflag [#allocation5], %s514_s5 }
 0x13b   : > { %p726_p0 = pnand %p1185_p12, %p1184_p8 }
 0x13d   : > { %p727_p2 = pneg %p726_p0 }
 0x13f   : > { %911 = dma.done.wait (%p727_p2), %s515_s6, 512  }
 0x140   : > { %913 = vsyncadd (%p727_p2), %s515_s6, 4294966784  ;;  %s20_s17 = sadd.s32 1, %s936_s17   ;;  %s1186_s12 = smov %s920_s13 }
 0x141   : > { %p17_p3 = scmp.ge.s32.totalorder %s20_s17, 4   ;;  %s1187_s13 = smov %s924_s14 }
 0x142   : > { %s1188_s14 = smov %s1064_s19  ;;  %s1189_s15 = smov %s932_s16 }
 0x143   : > { %s1190_s16 = smov %s1192_s28  ;;  %19 = sbr.rel (!%p17_p3) target bundleno = 7 (0x7), region = 90 }
 0x148   :  { %520 = vsyncpa [#allocation4], 1 }
 0x149   :  { %522 = vsyncpa [#allocation4 + $0x1], 1 }
 0x14a   :  { %523 = vsyncpa [#allocation7], 1 }
 0x14b   :  { %524 = vsyncpa [#allocation5], 1 }
 0x14c   :  { %526 = vsyncpa [#allocation5 + $0x1], 1 }

</bundles_post_ra>
